<compile_context>
chip_gen: v7x
topology: tpu7x:2x2x1
jax: 0.10.0
libtpu: 0.0.40
codegen_flags: <defaults>
</compile_context>

<pallas_src>
import jax
import jax.numpy as jnp
from jax import lax
from jax.experimental import pallas as pl
from jax.experimental.pallas import tpu as pltpu

# ---- tiny synthetic LM config (deterministic, in-script) -------------------
VOCAB = 64
SEQ = 8
HIDDEN = 32
HEADS = 2
HEAD_DIM = HIDDEN // HEADS
MLP = 64
EPS = 1e-5

# lane-dense padded sizes (TPU vreg tile = 8 x 128)
LANE = 128
HID_PAD = 128      # hidden padded to full lane width
VOCAB_PAD = 128    # logits lanes
VOCAB_ROWS = 128   # embedding-table rows (one-hot contraction dim)

# QKV lane layout inside the fused projection output
Q_OFF, K_OFF, V_OFF = 0, HIDDEN, 2 * HIDDEN   # 0, 32, 64 (96 real lanes)

# slice offsets inside the packed (N_W, 128, 128) bf16 weight slab
_QKV, _WO, _W1, _W2, _WLM = 0, 1, 2, 3, 4
N_W = 5


def protolmm_kernel(ids_ref, emb_ref, w_ref, ln_ref, z_ref, logits_ref):
    f32 = jnp.float32
    bf16 = jnp.bfloat16

    # ---- embedding lookup as one-hot @ table on the MXU (no serialized
    #      scalar-gated gather, no scratch) ---------------------------------
    ids_col = ids_ref[0]                                         # (SEQ, 1) i32
    vocab_iota = lax.broadcasted_iota(jnp.int32, (SEQ, VOCAB_ROWS), 1)
    onehot = (vocab_iota == ids_col).astype(bf16)                # (SEQ, 128)
    x = jnp.dot(onehot, emb_ref[...], preferred_element_type=f32)  # (SEQ, 128)

    inv_h = 1.0 / HIDDEN

    def layernorm(v, g, b):
        # pad lanes of v are exactly zero, so unmasked sums give exact stats;
        # g/b are zero in pad lanes so the output stays zero there too.
        mu = jnp.sum(v, axis=-1, keepdims=True) * inv_h
        var = jnp.sum(v * v, axis=-1, keepdims=True) * inv_h - mu * mu
        return (v - mu) * lax.rsqrt(var + EPS) * g + b

    g1, b1 = ln_ref[0:1, :], ln_ref[1:2, :]
    g2, b2 = ln_ref[2:3, :], ln_ref[3:4, :]
    gF, bF = ln_ref[4:5, :], ln_ref[5:6, :]

    # ---- attention block: fused QKV projection (1 MXU matmul, was 6) -------
    h = layernorm(x, g1, b1)
    qkv = jnp.dot(h.astype(bf16), w_ref[_QKV],
                  preferred_element_type=f32)                    # (SEQ, 128)

    row = lax.broadcasted_iota(jnp.int32, (SEQ, SEQ), 0)
    col = lax.broadcasted_iota(jnp.int32, (SEQ, SEQ), 1)
    causal = row >= col
    scale = 1.0 / (HEAD_DIM ** 0.5)

    outs = []
    for hd in range(HEADS):                                      # static, 2 iters
        q_h = qkv[:, Q_OFF + hd * HEAD_DIM:Q_OFF + (hd + 1) * HEAD_DIM]
        k_h = qkv[:, K_OFF + hd * HEAD_DIM:K_OFF + (hd + 1) * HEAD_DIM]
        v_h = qkv[:, V_OFF + hd * HEAD_DIM:V_OFF + (hd + 1) * HEAD_DIM]
        # minor-dim contraction; any relayout here is tiny and XLU has slack.
        s = jnp.einsum('qd,kd->qk', q_h, k_h,
                       preferred_element_type=f32) * scale       # (SEQ, SEQ)
        s = jnp.where(causal, s, -1e30)
        s = s - jnp.max(s, axis=-1, keepdims=True)
        p = jnp.exp(s)
        p = p * pl.reciprocal(jnp.sum(p, axis=-1, keepdims=True), approx=True)
        outs.append(jnp.dot(p, v_h, preferred_element_type=f32))  # (SEQ, 16)

    # head-sum folded into a single contraction over the concatenated axis
    o_cat = jnp.concatenate(outs, axis=-1).astype(bf16)          # (SEQ, 32)
    wo = w_ref[_WO][:HIDDEN, :]                                  # (32, 128)
    x = x + jnp.dot(o_cat, wo, preferred_element_type=f32)

    # ---- MLP block (pre-LN, GELU; elementwise math stays f32) --------------
    h = layernorm(x, g2, b2)
    h = jnp.dot(h.astype(bf16), w_ref[_W1], preferred_element_type=f32)
    # TODO(synk): HF models that use exact erf GELU would differ slightly;
    # tanh-approximate GELU is used here.
    h = jax.nn.gelu(h, approximate=True)
    x = x + jnp.dot(h.astype(bf16), w_ref[_W2], preferred_element_type=f32)

    # ---- final norm -> latent z ; LM head -> logits (lane-dense stores) ----
    z = layernorm(x, gF, bF)
    z_ref[0] = z
    logits_ref[0] = jnp.dot(z.astype(bf16), w_ref[_WLM],
                            preferred_element_type=f32)


def init_params(key):
    ks = jax.random.split(key, 8)
    n = lambda k, shape: (0.02 * jax.random.normal(k, shape)).astype(jnp.float32)
    return {
        "embed": n(ks[0], (VOCAB, HIDDEN)),
        "wq": n(ks[1], (HIDDEN, HIDDEN)),
        "wk": n(ks[2], (HIDDEN, HIDDEN)),
        "wv": n(ks[3], (HIDDEN, HIDDEN)),
        "wo": n(ks[4], (HIDDEN, HIDDEN)),
        "w1": n(ks[5], (HIDDEN, MLP)),
        "w2": n(ks[6], (MLP, HIDDEN)),
        "ln1g": jnp.ones((1, HIDDEN), jnp.float32),
        "ln1b": jnp.zeros((1, HIDDEN), jnp.float32),
        "ln2g": jnp.ones((1, HIDDEN), jnp.float32),
        "ln2b": jnp.zeros((1, HIDDEN), jnp.float32),
        "lnfg": jnp.ones((1, HIDDEN), jnp.float32),
        "lnfb": jnp.zeros((1, HIDDEN), jnp.float32),
        "wlm": n(ks[7], (HIDDEN, VOCAB)),
    }


def pack_params(p):
    """Pad to 128 lanes, fuse QKV column-wise, pack into 3 kernel inputs."""
    f32 = jnp.float32

    def pad2(w, rows=LANE, cols=LANE):
        out = jnp.zeros((rows, cols), f32)
        return out.at[:w.shape[0], :w.shape[1]].set(w.astype(f32))

    # fused QKV: output lanes [0:32)=Q, [32:64)=K, [64:96)=V (head-major
    # within each 32-lane group, matching the reference column layout).
    wqkv = jnp.zeros((LANE, LANE), f32)
    wqkv = wqkv.at[:HIDDEN, Q_OFF:Q_OFF + HIDDEN].set(p["wq"])
    wqkv = wqkv.at[:HIDDEN, K_OFF:K_OFF + HIDDEN].set(p["wk"])
    wqkv = wqkv.at[:HIDDEN, V_OFF:V_OFF + HIDDEN].set(p["wv"])

    wslab = jnp.stack(
        [wqkv, pad2(p["wo"]), pad2(p["w1"]), pad2(p["w2"]), pad2(p["wlm"])],
        axis=0).astype(jnp.bfloat16)                    # (5, 128, 128) bf16

    emb = pad2(p["embed"], VOCAB_ROWS, HID_PAD).astype(jnp.bfloat16)  # (128,128)

    lnslab = jnp.zeros((8, HID_PAD), f32)
    for i, name in enumerate(["ln1g", "ln1b", "ln2g", "ln2b", "lnfg", "lnfb"]):
        lnslab = lnslab.at[i, :HIDDEN].set(p[name].reshape(-1).astype(f32))

    return {"emb": emb, "wslab": wslab, "lnslab": lnslab}


@jax.jit
def protolmm_forward(input_ids, packed):
    """Returns (logits [B, SEQ, VOCAB], z [B, SEQ, HIDDEN])."""
    # TODO(synk): tokenizer / chat-template construction is host string
    # processing with no Pallas equivalent; input_ids are taken as given.
    ids = input_ids.astype(jnp.int32)
    B = ids.shape[0]
    ids3 = ids.reshape(B, SEQ, 1)                       # tiny VMEM int vector

    grid_spec = pltpu.PrefetchScalarGridSpec(
        num_scalar_prefetch=0,
        grid=(B,),                                       # parallel batch axis
        in_specs=[
            pl.BlockSpec((1, SEQ, 1), lambda b: (b, 0, 0)),
            pl.BlockSpec((VOCAB_ROWS, HID_PAD), lambda b: (0, 0)),
            pl.BlockSpec((N_W, LANE, LANE), lambda b: (0, 0, 0)),
            pl.BlockSpec((8, HID_PAD), lambda b: (0, 0)),
        ],
        out_specs=(
            pl.BlockSpec((1, SEQ, HID_PAD), lambda b: (b, 0, 0)),
            pl.BlockSpec((1, SEQ, VOCAB_PAD), lambda b: (b, 0, 0)),
        ),
    )

    z_pad, logits_pad = pl.pallas_call(
        protolmm_kernel,
        grid_spec=grid_spec,
        out_shape=(jax.ShapeDtypeStruct((B, SEQ, HID_PAD), jnp.float32),
                   jax.ShapeDtypeStruct((B, SEQ, VOCAB_PAD), jnp.float32)),
        compiler_params=pltpu.CompilerParams(
            dimension_semantics=("parallel",)),
    )(ids3, packed["emb"], packed["wslab"], packed["lnslab"])

    # PyTorch module returns (logits, z) with a leading batch dim.
    logits = logits_pad[:, :, :VOCAB]
    z = z_pad[:, :, :HIDDEN]
    return logits, z


def protolmm_reference(input_ids, params):
    """Pure-JAX f32 reference with identical math (unpadded)."""
    x = params["embed"][input_ids[0]]

    def ln(v, g, b):
        mu = jnp.mean(v, axis=-1, keepdims=True)
        var = jnp.mean((v - mu) ** 2, axis=-1, keepdims=True)
        return (v - mu) * lax.rsqrt(var + EPS) * g + b

    h = ln(x, params["ln1g"], params["ln1b"])
    q, k, v = h @ params["wq"], h @ params["wk"], h @ params["wv"]
    causal = jnp.arange(SEQ)[:, None] >= jnp.arange(SEQ)[None, :]
    scale = 1.0 / (HEAD_DIM ** 0.5)
    outs = []
    for hd in range(HEADS):
        sl = slice(hd * HEAD_DIM, (hd + 1) * HEAD_DIM)
        s = (q[:, sl] @ k[:, sl].T) * scale
        s = jnp.where(causal, s, -1e30)
        outs.append(jax.nn.softmax(s, axis=-1) @ v[:, sl])
    x = x + jnp.concatenate(outs, axis=-1) @ params["wo"]
    h = ln(x, params["ln2g"], params["ln2b"])
    x = x + jax.nn.gelu(h @ params["w1"], approximate=True) @ params["w2"]
    z = ln(x, params["lnfg"], params["lnfb"])
    return (z @ params["wlm"])[None], z[None]


if __name__ == "__main__":
    key = jax.random.PRNGKey(0)
    pkey, ikey = jax.random.split(key)
    params = init_params(pkey)
    packed = pack_params(params)
    # synthetic "tokenized prompt": batch=1, seq=8 (module semantics)
    input_ids = jax.random.randint(ikey, (1, SEQ), 0, VOCAB, dtype=jnp.int32)

    logits, z = protolmm_forward(input_ids, packed)
    jax.block_until_ready((logits, z))

    assert logits.shape == (1, SEQ, VOCAB), logits.shape
    assert z.shape == (1, SEQ, HIDDEN), z.shape
    assert bool(jnp.all(jnp.isfinite(logits))) and bool(jnp.all(jnp.isfinite(z)))

    # correctness vs. pure-JAX f32 reference (loose tol: bf16 weights +
    # approx reciprocal softmax + MXU accumulation order)
    ref_logits, ref_z = protolmm_reference(input_ids, params)
    rel = lambda a, b: float(jnp.max(jnp.abs(a - b)) /
                             (jnp.max(jnp.abs(b)) + 1e-9))
    assert rel(logits, ref_logits) < 5e-2, rel(logits, ref_logits)
    assert rel(z, ref_z) < 5e-2, rel(z, ref_z)
    print("KERNEL_OK")
</pallas_src>

<mosaic_0001>
module attributes {stable_mosaic.version = 11 : i64} {
  func.func @protolmm_kernel(%arg0: i32, %arg1: memref<1x8x1xi32, #tpu.memory_space<vmem>>, %arg2: memref<128x128xbf16, #tpu.memory_space<vmem>>, %arg3: memref<5x128x128xbf16, #tpu.memory_space<vmem>>, %arg4: memref<8x128xf32, #tpu.memory_space<vmem>>, %arg5: memref<1x8x128xf32, #tpu.memory_space<vmem>>, %arg6: memref<1x8x128xf32, #tpu.memory_space<vmem>>) attributes {dimension_semantics = [#tpu.dimension_semantics<parallel>], iteration_bounds = array<i64: 1>, scalar_prefetch = 0 : i64, scratch_operands = 0 : i64, tpu.core_type = #tpu.core_type<tc>, window_params = [{transform_indices = @transform_0, window_bounds = array<i64: 1, 8, 1>}, {pipeline_mode = #tpu.pipeline_mode<synchronous>, transform_indices = @transform_1, window_bounds = array<i64: 128, 128>}, {pipeline_mode = #tpu.pipeline_mode<synchronous>, transform_indices = @transform_2, window_bounds = array<i64: 5, 128, 128>}, {pipeline_mode = #tpu.pipeline_mode<synchronous>, transform_indices = @transform_3, window_bounds = array<i64: 8, 128>}, {transform_indices = @transform_4, window_bounds = array<i64: 1, 8, 128>}, {transform_indices = @transform_5, window_bounds = array<i64: 1, 8, 128>}]} {
    %c0 = arith.constant 0 : index
    %c0_0 = arith.constant 0 : index
    %c0_1 = arith.constant 0 : index
    %0 = vector.load %arg1[%c0, %c0_0, %c0_1] : memref<1x8x1xi32, #tpu.memory_space<vmem>>, vector<1x8x1xi32>
    %1 = vector.shape_cast %0 : vector<1x8x1xi32> to vector<8x1xi32>
    %2 = tpu.iota {dimensions = array<i32: 1>} : vector<8x128xi32>
    %3 = vector.broadcast %1 : vector<8x1xi32> to vector<8x128xi32>
    %4 = arith.cmpi eq, %2, %3 : vector<8x128xi32>
    %5 = arith.extui %4 : vector<8x128xi1> to vector<8x128xi32>
    %6 = arith.sitofp %5 : vector<8x128xi32> to vector<8x128xf32>
    %7 = arith.truncf %6 : vector<8x128xf32> to vector<8x128xbf16>
    %c0_2 = arith.constant 0 : index
    %c0_3 = arith.constant 0 : index
    %8 = vector.load %arg2[%c0_2, %c0_3] : memref<128x128xbf16, #tpu.memory_space<vmem>>, vector<128x128xbf16>
    %cst = arith.constant dense<0.000000e+00> : vector<8x128xf32>
    %9 = tpu.matmul %7, %8, %cst {dimension_numbers = #tpu.dot_dimension_numbers<[1], [0], [0], [1], [0, 0, 1, 1], [], []>} : vector<8x128xbf16>, vector<128x128xbf16>, vector<8x128xf32> -> vector<8x128xf32>
    %c0_4 = arith.constant 0 : index
    %c0_5 = arith.constant 0 : index
    %10 = vector.load %arg4[%c0_4, %c0_5] : memref<8x128xf32, #tpu.memory_space<vmem>>, vector<1x128xf32>
    %c1 = arith.constant 1 : index
    %c0_6 = arith.constant 0 : index
    %11 = vector.load %arg4[%c1, %c0_6] : memref<8x128xf32, #tpu.memory_space<vmem>>, vector<1x128xf32>
    %c2 = arith.constant 2 : index
    %c0_7 = arith.constant 0 : index
    %12 = vector.load %arg4[%c2, %c0_7] : memref<8x128xf32, #tpu.memory_space<vmem>>, vector<1x128xf32>
    %c3 = arith.constant 3 : index
    %c0_8 = arith.constant 0 : index
    %13 = vector.load %arg4[%c3, %c0_8] : memref<8x128xf32, #tpu.memory_space<vmem>>, vector<1x128xf32>
    %c4 = arith.constant 4 : index
    %c0_9 = arith.constant 0 : index
    %14 = vector.load %arg4[%c4, %c0_9] : memref<8x128xf32, #tpu.memory_space<vmem>>, vector<1x128xf32>
    %c5 = arith.constant 5 : index
    %c0_10 = arith.constant 0 : index
    %15 = vector.load %arg4[%c5, %c0_10] : memref<8x128xf32, #tpu.memory_space<vmem>>, vector<1x128xf32>
    %cst_11 = arith.constant dense<0.000000e+00> : vector<8xf32>
    %16 = vector.multi_reduction <add>, %9, %cst_11 [1] : vector<8x128xf32> to vector<8xf32>
    %17 = vector.shape_cast %16 : vector<8xf32> to vector<8x1xf32>
    %cst_12 = arith.constant 3.125000e-02 : f32
    %18 = vector.broadcast %cst_12 : f32 to vector<8x1xf32>
    %19 = arith.mulf %17, %18 : vector<8x1xf32>
    %20 = arith.mulf %9, %9 : vector<8x128xf32>
    %cst_13 = arith.constant dense<0.000000e+00> : vector<8xf32>
    %21 = vector.multi_reduction <add>, %20, %cst_13 [1] : vector<8x128xf32> to vector<8xf32>
    %22 = vector.shape_cast %21 : vector<8xf32> to vector<8x1xf32>
    %cst_14 = arith.constant 3.125000e-02 : f32
    %23 = vector.broadcast %cst_14 : f32 to vector<8x1xf32>
    %24 = arith.mulf %22, %23 : vector<8x1xf32>
    %25 = arith.mulf %19, %19 : vector<8x1xf32>
    %26 = arith.subf %24, %25 : vector<8x1xf32>
    %27 = vector.broadcast %19 : vector<8x1xf32> to vector<8x128xf32>
    %28 = arith.subf %9, %27 : vector<8x128xf32>
    %cst_15 = arith.constant 9.99999974E-6 : f32
    %29 = vector.broadcast %cst_15 : f32 to vector<8x1xf32>
    %30 = arith.addf %26, %29 : vector<8x1xf32>
    %31 = math.rsqrt %30 : vector<8x1xf32>
    %32 = vector.broadcast %31 : vector<8x1xf32> to vector<8x128xf32>
    %33 = arith.mulf %28, %32 : vector<8x128xf32>
    %34 = vector.broadcast %10 : vector<1x128xf32> to vector<8x128xf32>
    %35 = arith.mulf %33, %34 : vector<8x128xf32>
    %36 = vector.broadcast %11 : vector<1x128xf32> to vector<8x128xf32>
    %37 = arith.addf %35, %36 : vector<8x128xf32>
    %38 = arith.truncf %37 : vector<8x128xf32> to vector<8x128xbf16>
    %c0_16 = arith.constant 0 : index
    %c0_17 = arith.constant 0 : index
    %c0_18 = arith.constant 0 : index
    %39 = vector.load %arg3[%c0_16, %c0_17, %c0_18] : memref<5x128x128xbf16, #tpu.memory_space<vmem>>, vector<1x128x128xbf16>
    %40 = vector.shape_cast %39 : vector<1x128x128xbf16> to vector<128x128xbf16>
    %cst_19 = arith.constant dense<0.000000e+00> : vector<8x128xf32>
    %41 = tpu.matmul %38, %40, %cst_19 {dimension_numbers = #tpu.dot_dimension_numbers<[1], [0], [0], [1], [0, 0, 1, 1], [], []>} : vector<8x128xbf16>, vector<128x128xbf16>, vector<8x128xf32> -> vector<8x128xf32>
    %42 = tpu.iota {dimensions = array<i32: 0>} : vector<8x8xi32>
    %43 = tpu.iota {dimensions = array<i32: 1>} : vector<8x8xi32>
    %44 = arith.cmpi sge, %42, %43 : vector<8x8xi32>
    %45 = vector.extract_strided_slice %41 {offsets = [0, 0], sizes = [8, 16], strides = [1, 1]} : vector<8x128xf32> to vector<8x16xf32>
    %46 = vector.extract_strided_slice %41 {offsets = [0, 32], sizes = [8, 16], strides = [1, 1]} : vector<8x128xf32> to vector<8x16xf32>
    %47 = vector.extract_strided_slice %41 {offsets = [0, 64], sizes = [8, 16], strides = [1, 1]} : vector<8x128xf32> to vector<8x16xf32>
    "tpu.trace_start"() <{level = 10 : i32, message = "qd,kd->qk"}> : () -> ()
    %cst_20 = arith.constant dense<0.000000e+00> : vector<8x8xf32>
    %48 = tpu.matmul %45, %46, %cst_20 {dimension_numbers = #tpu.dot_dimension_numbers<[1], [1], [0], [0], [0, 0, 1, 0], [], []>} : vector<8x16xf32>, vector<8x16xf32>, vector<8x8xf32> -> vector<8x8xf32>
    "tpu.trace_stop"() : () -> ()
    %cst_21 = arith.constant 2.500000e-01 : f32
    %49 = vector.broadcast %cst_21 : f32 to vector<8x8xf32>
    %50 = arith.mulf %48, %49 : vector<8x8xf32>
    %cst_22 = arith.constant -1.000000e+30 : f32
    %51 = vector.broadcast %cst_22 : f32 to vector<8x8xf32>
    %52 = arith.select %44, %50, %51 : vector<8x8xi1>, vector<8x8xf32>
    %cst_23 = arith.constant dense<0xFF800000> : vector<8xf32>
    %53 = vector.multi_reduction <maximumf>, %52, %cst_23 [1] : vector<8x8xf32> to vector<8xf32>
    %54 = vector.shape_cast %53 : vector<8xf32> to vector<8x1xf32>
    %55 = vector.broadcast %54 : vector<8x1xf32> to vector<8x8xf32>
    %56 = arith.subf %52, %55 : vector<8x8xf32>
    %57 = math.exp %56 : vector<8x8xf32>
    %cst_24 = arith.constant dense<0.000000e+00> : vector<8xf32>
    %58 = vector.multi_reduction <add>, %57, %cst_24 [1] : vector<8x8xf32> to vector<8xf32>
    %59 = vector.shape_cast %58 : vector<8xf32> to vector<8x1xf32>
    %60 = tpu.reciprocal %59 {approx = true} : vector<8x1xf32> -> vector<8x1xf32>
    %61 = vector.broadcast %60 : vector<8x1xf32> to vector<8x8xf32>
    %62 = arith.mulf %57, %61 : vector<8x8xf32>
    %cst_25 = arith.constant dense<0.000000e+00> : vector<8x16xf32>
    %63 = tpu.matmul %62, %47, %cst_25 {dimension_numbers = #tpu.dot_dimension_numbers<[1], [0], [0], [1], [0, 0, 1, 1], [], []>} : vector<8x8xf32>, vector<8x16xf32>, vector<8x16xf32> -> vector<8x16xf32>
    %64 = vector.extract_strided_slice %41 {offsets = [0, 16], sizes = [8, 16], strides = [1, 1]} : vector<8x128xf32> to vector<8x16xf32>
    %65 = vector.extract_strided_slice %41 {offsets = [0, 48], sizes = [8, 16], strides = [1, 1]} : vector<8x128xf32> to vector<8x16xf32>
    %66 = vector.extract_strided_slice %41 {offsets = [0, 80], sizes = [8, 16], strides = [1, 1]} : vector<8x128xf32> to vector<8x16xf32>
    "tpu.trace_start"() <{level = 10 : i32, message = "qd,kd->qk"}> : () -> ()
    %cst_26 = arith.constant dense<0.000000e+00> : vector<8x8xf32>
    %67 = tpu.matmul %64, %65, %cst_26 {dimension_numbers = #tpu.dot_dimension_numbers<[1], [1], [0], [0], [0, 0, 1, 0], [], []>} : vector<8x16xf32>, vector<8x16xf32>, vector<8x8xf32> -> vector<8x8xf32>
    "tpu.trace_stop"() : () -> ()
    %cst_27 = arith.constant 2.500000e-01 : f32
    %68 = vector.broadcast %cst_27 : f32 to vector<8x8xf32>
    %69 = arith.mulf %67, %68 : vector<8x8xf32>
    %cst_28 = arith.constant -1.000000e+30 : f32
    %70 = vector.broadcast %cst_28 : f32 to vector<8x8xf32>
    %71 = arith.select %44, %69, %70 : vector<8x8xi1>, vector<8x8xf32>
    %cst_29 = arith.constant dense<0xFF800000> : vector<8xf32>
    %72 = vector.multi_reduction <maximumf>, %71, %cst_29 [1] : vector<8x8xf32> to vector<8xf32>
    %73 = vector.shape_cast %72 : vector<8xf32> to vector<8x1xf32>
    %74 = vector.broadcast %73 : vector<8x1xf32> to vector<8x8xf32>
    %75 = arith.subf %71, %74 : vector<8x8xf32>
    %76 = math.exp %75 : vector<8x8xf32>
    %cst_30 = arith.constant dense<0.000000e+00> : vector<8xf32>
    %77 = vector.multi_reduction <add>, %76, %cst_30 [1] : vector<8x8xf32> to vector<8xf32>
    %78 = vector.shape_cast %77 : vector<8xf32> to vector<8x1xf32>
    %79 = tpu.reciprocal %78 {approx = true} : vector<8x1xf32> -> vector<8x1xf32>
    %80 = vector.broadcast %79 : vector<8x1xf32> to vector<8x8xf32>
    %81 = arith.mulf %76, %80 : vector<8x8xf32>
    %cst_31 = arith.constant dense<0.000000e+00> : vector<8x16xf32>
    %82 = tpu.matmul %81, %66, %cst_31 {dimension_numbers = #tpu.dot_dimension_numbers<[1], [0], [0], [1], [0, 0, 1, 1], [], []>} : vector<8x8xf32>, vector<8x16xf32>, vector<8x16xf32> -> vector<8x16xf32>
    %83 = tpu.concatenate %63, %82 in 1 : vector<8x16xf32>, vector<8x16xf32> -> vector<8x32xf32>
    %84 = arith.truncf %83 : vector<8x32xf32> to vector<8x32xbf16>
    %c1_32 = arith.constant 1 : index
    %c0_33 = arith.constant 0 : index
    %c0_34 = arith.constant 0 : index
    %85 = vector.load %arg3[%c1_32, %c0_33, %c0_34] : memref<5x128x128xbf16, #tpu.memory_space<vmem>>, vector<1x128x128xbf16>
    %86 = vector.shape_cast %85 : vector<1x128x128xbf16> to vector<128x128xbf16>
    %87 = vector.extract_strided_slice %86 {offsets = [0, 0], sizes = [32, 128], strides = [1, 1]} : vector<128x128xbf16> to vector<32x128xbf16>
    %cst_35 = arith.constant dense<0.000000e+00> : vector<8x128xf32>
    %88 = tpu.matmul %84, %87, %cst_35 {dimension_numbers = #tpu.dot_dimension_numbers<[1], [0], [0], [1], [0, 0, 1, 1], [], []>} : vector<8x32xbf16>, vector<32x128xbf16>, vector<8x128xf32> -> vector<8x128xf32>
    %89 = arith.addf %9, %88 : vector<8x128xf32>
    %cst_36 = arith.constant dense<0.000000e+00> : vector<8xf32>
    %90 = vector.multi_reduction <add>, %89, %cst_36 [1] : vector<8x128xf32> to vector<8xf32>
    %91 = vector.shape_cast %90 : vector<8xf32> to vector<8x1xf32>
    %cst_37 = arith.constant 3.125000e-02 : f32
    %92 = vector.broadcast %cst_37 : f32 to vector<8x1xf32>
    %93 = arith.mulf %91, %92 : vector<8x1xf32>
    %94 = arith.mulf %89, %89 : vector<8x128xf32>
    %cst_38 = arith.constant dense<0.000000e+00> : vector<8xf32>
    %95 = vector.multi_reduction <add>, %94, %cst_38 [1] : vector<8x128xf32> to vector<8xf32>
    %96 = vector.shape_cast %95 : vector<8xf32> to vector<8x1xf32>
    %cst_39 = arith.constant 3.125000e-02 : f32
    %97 = vector.broadcast %cst_39 : f32 to vector<8x1xf32>
    %98 = arith.mulf %96, %97 : vector<8x1xf32>
    %99 = arith.mulf %93, %93 : vector<8x1xf32>
    %100 = arith.subf %98, %99 : vector<8x1xf32>
    %101 = vector.broadcast %93 : vector<8x1xf32> to vector<8x128xf32>
    %102 = arith.subf %89, %101 : vector<8x128xf32>
    %cst_40 = arith.constant 9.99999974E-6 : f32
    %103 = vector.broadcast %cst_40 : f32 to vector<8x1xf32>
    %104 = arith.addf %100, %103 : vector<8x1xf32>
    %105 = math.rsqrt %104 : vector<8x1xf32>
    %106 = vector.broadcast %105 : vector<8x1xf32> to vector<8x128xf32>
    %107 = arith.mulf %102, %106 : vector<8x128xf32>
    %108 = vector.broadcast %12 : vector<1x128xf32> to vector<8x128xf32>
    %109 = arith.mulf %107, %108 : vector<8x128xf32>
    %110 = vector.broadcast %13 : vector<1x128xf32> to vector<8x128xf32>
    %111 = arith.addf %109, %110 : vector<8x128xf32>
    %112 = arith.truncf %111 : vector<8x128xf32> to vector<8x128xbf16>
    %c2_41 = arith.constant 2 : index
    %c0_42 = arith.constant 0 : index
    %c0_43 = arith.constant 0 : index
    %113 = vector.load %arg3[%c2_41, %c0_42, %c0_43] : memref<5x128x128xbf16, #tpu.memory_space<vmem>>, vector<1x128x128xbf16>
    %114 = vector.shape_cast %113 : vector<1x128x128xbf16> to vector<128x128xbf16>
    %cst_44 = arith.constant dense<0.000000e+00> : vector<8x128xf32>
    %115 = tpu.matmul %112, %114, %cst_44 {dimension_numbers = #tpu.dot_dimension_numbers<[1], [0], [0], [1], [0, 0, 1, 1], [], []>} : vector<8x128xbf16>, vector<128x128xbf16>, vector<8x128xf32> -> vector<8x128xf32>
    %116 = arith.mulf %115, %115 : vector<8x128xf32>
    %117 = arith.mulf %115, %116 : vector<8x128xf32>
    %cst_45 = arith.constant 4.471500e-02 : f32
    %118 = vector.broadcast %cst_45 : f32 to vector<8x128xf32>
    %119 = arith.mulf %118, %117 : vector<8x128xf32>
    %120 = arith.addf %115, %119 : vector<8x128xf32>
    %cst_46 = arith.constant 0.797884583 : f32
    %121 = vector.broadcast %cst_46 : f32 to vector<8x128xf32>
    %122 = arith.mulf %121, %120 : vector<8x128xf32>
    %123 = math.tanh %122 : vector<8x128xf32>
    %cst_47 = arith.constant 1.000000e+00 : f32
    %124 = vector.broadcast %cst_47 : f32 to vector<8x128xf32>
    %125 = arith.addf %124, %123 : vector<8x128xf32>
    %cst_48 = arith.constant 5.000000e-01 : f32
    %126 = vector.broadcast %cst_48 : f32 to vector<8x128xf32>
    %127 = arith.mulf %126, %125 : vector<8x128xf32>
    %128 = arith.mulf %115, %127 : vector<8x128xf32>
    %129 = arith.truncf %128 : vector<8x128xf32> to vector<8x128xbf16>
    %c3_49 = arith.constant 3 : index
    %c0_50 = arith.constant 0 : index
    %c0_51 = arith.constant 0 : index
    %130 = vector.load %arg3[%c3_49, %c0_50, %c0_51] : memref<5x128x128xbf16, #tpu.memory_space<vmem>>, vector<1x128x128xbf16>
    %131 = vector.shape_cast %130 : vector<1x128x128xbf16> to vector<128x128xbf16>
    %cst_52 = arith.constant dense<0.000000e+00> : vector<8x128xf32>
    %132 = tpu.matmul %129, %131, %cst_52 {dimension_numbers = #tpu.dot_dimension_numbers<[1], [0], [0], [1], [0, 0, 1, 1], [], []>} : vector<8x128xbf16>, vector<128x128xbf16>, vector<8x128xf32> -> vector<8x128xf32>
    %133 = arith.addf %89, %132 : vector<8x128xf32>
    %cst_53 = arith.constant dense<0.000000e+00> : vector<8xf32>
    %134 = vector.multi_reduction <add>, %133, %cst_53 [1] : vector<8x128xf32> to vector<8xf32>
    %135 = vector.shape_cast %134 : vector<8xf32> to vector<8x1xf32>
    %cst_54 = arith.constant 3.125000e-02 : f32
    %136 = vector.broadcast %cst_54 : f32 to vector<8x1xf32>
    %137 = arith.mulf %135, %136 : vector<8x1xf32>
    %138 = arith.mulf %133, %133 : vector<8x128xf32>
    %cst_55 = arith.constant dense<0.000000e+00> : vector<8xf32>
    %139 = vector.multi_reduction <add>, %138, %cst_55 [1] : vector<8x128xf32> to vector<8xf32>
    %140 = vector.shape_cast %139 : vector<8xf32> to vector<8x1xf32>
    %cst_56 = arith.constant 3.125000e-02 : f32
    %141 = vector.broadcast %cst_56 : f32 to vector<8x1xf32>
    %142 = arith.mulf %140, %141 : vector<8x1xf32>
    %143 = arith.mulf %137, %137 : vector<8x1xf32>
    %144 = arith.subf %142, %143 : vector<8x1xf32>
    %145 = vector.broadcast %137 : vector<8x1xf32> to vector<8x128xf32>
    %146 = arith.subf %133, %145 : vector<8x128xf32>
    %cst_57 = arith.constant 9.99999974E-6 : f32
    %147 = vector.broadcast %cst_57 : f32 to vector<8x1xf32>
    %148 = arith.addf %144, %147 : vector<8x1xf32>
    %149 = math.rsqrt %148 : vector<8x1xf32>
    %150 = vector.broadcast %149 : vector<8x1xf32> to vector<8x128xf32>
    %151 = arith.mulf %146, %150 : vector<8x128xf32>
    %152 = vector.broadcast %14 : vector<1x128xf32> to vector<8x128xf32>
    %153 = arith.mulf %151, %152 : vector<8x128xf32>
    %154 = vector.broadcast %15 : vector<1x128xf32> to vector<8x128xf32>
    %155 = arith.addf %153, %154 : vector<8x128xf32>
    %c0_58 = arith.constant 0 : index
    %c0_59 = arith.constant 0 : index
    %c0_60 = arith.constant 0 : index
    %156 = vector.load %arg5[%c0_58, %c0_59, %c0_60] : memref<1x8x128xf32, #tpu.memory_space<vmem>>, vector<1x8x128xf32>
    %157 = vector.shape_cast %156 : vector<1x8x128xf32> to vector<8x128xf32>
    %158 = vector.shape_cast %155 : vector<8x128xf32> to vector<1x8x128xf32>
    tpu.vector_store %arg5[%c0_58, %c0_59, %c0_60], %158 {strides = array<i32>} : memref<1x8x128xf32, #tpu.memory_space<vmem>>, vector<1x8x128xf32>,
    %159 = arith.truncf %155 : vector<8x128xf32> to vector<8x128xbf16>
    %c4_61 = arith.constant 4 : index
    %c0_62 = arith.constant 0 : index
    %c0_63 = arith.constant 0 : index
    %160 = vector.load %arg3[%c4_61, %c0_62, %c0_63] : memref<5x128x128xbf16, #tpu.memory_space<vmem>>, vector<1x128x128xbf16>
    %161 = vector.shape_cast %160 : vector<1x128x128xbf16> to vector<128x128xbf16>
    %cst_64 = arith.constant dense<0.000000e+00> : vector<8x128xf32>
    %162 = tpu.matmul %159, %161, %cst_64 {dimension_numbers = #tpu.dot_dimension_numbers<[1], [0], [0], [1], [0, 0, 1, 1], [], []>} : vector<8x128xbf16>, vector<128x128xbf16>, vector<8x128xf32> -> vector<8x128xf32>
    %c0_65 = arith.constant 0 : index
    %c0_66 = arith.constant 0 : index
    %c0_67 = arith.constant 0 : index
    %163 = vector.load %arg6[%c0_65, %c0_66, %c0_67] : memref<1x8x128xf32, #tpu.memory_space<vmem>>, vector<1x8x128xf32>
    %164 = vector.shape_cast %163 : vector<1x8x128xf32> to vector<8x128xf32>
    %165 = vector.shape_cast %162 : vector<8x128xf32> to vector<1x8x128xf32>
    tpu.vector_store %arg6[%c0_65, %c0_66, %c0_67], %165 {strides = array<i32>} : memref<1x8x128xf32, #tpu.memory_space<vmem>>, vector<1x8x128xf32>,
    return
  }
  func.func @transform_0(%arg0: i32) -> (i32, i32, i32) {
    %c0_i32 = arith.constant 0 : i32
    %c0_i32_0 = arith.constant 0 : i32
    %c0_i32_1 = arith.constant 0 : i32
    return %arg0, %c0_i32, %c0_i32_0 : i32, i32, i32
  }
  func.func @transform_1(%arg0: i32) -> (i32, i32) {
    %c0_i32 = arith.constant 0 : i32
    %c0_i32_0 = arith.constant 0 : i32
    %c0_i32_1 = arith.constant 0 : i32
    return %c0_i32, %c0_i32_0 : i32, i32
  }
  func.func @transform_2(%arg0: i32) -> (i32, i32, i32) {
    %c0_i32 = arith.constant 0 : i32
    %c0_i32_0 = arith.constant 0 : i32
    %c0_i32_1 = arith.constant 0 : i32
    %c0_i32_2 = arith.constant 0 : i32
    return %c0_i32, %c0_i32_0, %c0_i32_1 : i32, i32, i32
  }
  func.func @transform_3(%arg0: i32) -> (i32, i32) {
    %c0_i32 = arith.constant 0 : i32
    %c0_i32_0 = arith.constant 0 : i32
    %c0_i32_1 = arith.constant 0 : i32
    return %c0_i32, %c0_i32_0 : i32, i32
  }
  func.func @transform_4(%arg0: i32) -> (i32, i32, i32) {
    %c0_i32 = arith.constant 0 : i32
    %c0_i32_0 = arith.constant 0 : i32
    %c0_i32_1 = arith.constant 0 : i32
    return %arg0, %c0_i32, %c0_i32_0 : i32, i32, i32
  }
  func.func @transform_5(%arg0: i32) -> (i32, i32, i32) {
    %c0_i32 = arith.constant 0 : i32
    %c0_i32_0 = arith.constant 0 : i32
    %c0_i32_1 = arith.constant 0 : i32
    return %arg0, %c0_i32, %c0_i32_0 : i32, i32, i32
  }
}

</mosaic_0001>

<bundles_post_ra>
// kernel: protolmm_forward.1
= control target key start
LH: loop header
LB: loop body
LE: loop exit
PB: predicated region body
PF: predicated region fallthrough
CT: control target
= control target key end

     0   :  { %11 = vsyncpa [#allocation3], 0  ;;  %s1742_s0 = inlined_call_operand.vmem [shape: s32[1,8,1], index: 0, kind: input, shape index: {}]   ;;  %s1743_s1 = inlined_call_operand.hbm [shape: bf16[128,128], index: 1, kind: input, shape index: {}]   ;;  %s1744_s2 = inlined_call_operand.hbm [shape: bf16[5,128,128], index: 2, kind: input, shape index: {}]   ;;  %s1745_s3 = inlined_call_operand.vmem [shape: f32[8,128], index: 3, kind: input, shape index: {}]   ;;  %s1746_s4 = inlined_call_operand.hbm [shape: f32[1,8,128], index: 4, kind: output, shape index: {0}]   ;;  %s1747_s5 = inlined_call_operand.hbm [shape: f32[1,8,128], index: 5, kind: output, shape index: {1}]  }
   0x1   :  { %12 = vsyncpa [#allocation6], 0 }
   0x2   :  { %13 = vsyncpa [#allocation4], 0 }
   0x3   :  { %14 = vsyncpa [#allocation9], 0  ;;  %s1522_s18 = smov [#allocation2]   ;;  %s1426_s22 = scalar_lea.hbm %s1743_s1, 1024 }
   0x4   :  { %s22_s19 = sshll.u32 %s1522_s18, 4  ;;  %p1427_p0 = scmp.ne.s32.totalorder %s1743_s1, %s1426_s22  ;;  %s23_s19 = int_to_ptr.vmem [resolvable:$true] %s22_s19 }
   0x5   :  { %p1430_p1 = scmp.lt.u32.totalorder %s1426_s22, %s1743_s1 }
   0x7   :  { %p1432_p2 = pnand %p1430_p1, %p1427_p0 }
   0x9   :  { %1435 = shalt.err (!%p1432_p2)
}
   0xa   :  { %s1436_s27 = scalar_lea.vmem %s23_s19, 1024  ;;  %p1441_p4 = scmp.lt.s32.totalorder %s23_s19, %s23_s19 }
   0xb   :  { %p1437_p3 = scmp.ne.s32.totalorder %s23_s19, %s1436_s27  ;;  %p1442_p5 = scmp.lt.s32.totalorder %s1436_s27, %s1436_s27 }
   0xd   :  { %p1443_p6 = por %p1442_p5, %p1441_p4 }
   0xf   :  { %p1444_p7 = pnand %p1443_p6, %p1437_p3 }
  0x11   :  { %1447 = shalt.err (!%p1444_p7)
}
  0x12   :  { %s1523_s28 = smov 64   ;;  %s1524_s29 = smov 4  }
  0x13   :  { %28 = dma.hbm_to_vmem [thread:$0]  %s1743_s1, 1024, %s23_s19, [#allocation3], %s1523_s28, %s1523_s28, %s1524_s29  }
  0x14   :  { %s1525_s7 = smov [#allocation5]   ;;  %s1448_s11 = scalar_lea.hbm %s1744_s2, 5120 }
  0x15   :  { %s34_s8 = sshll.u32 %s1525_s7, 4  ;;  %p1449_p8 = scmp.ne.s32.totalorder %s1744_s2, %s1448_s11  ;;  %s35_s8 = int_to_ptr.vmem [resolvable:$true] %s34_s8 }
  0x16   :  { %p1452_p9 = scmp.lt.u32.totalorder %s1448_s11, %s1744_s2 }
  0x18   :  { %p1454_p10 = pnand %p1452_p9, %p1449_p8 }
  0x1a   :  { %1457 = shalt.err (!%p1454_p10)
}
  0x1b   :  { %s1458_s16 = scalar_lea.vmem %s35_s8, 5120  ;;  %p1463_p12 = scmp.lt.s32.totalorder %s35_s8, %s35_s8 }
  0x1c   :  { %p1459_p11 = scmp.ne.s32.totalorder %s35_s8, %s1458_s16  ;;  %p1464_p13 = scmp.lt.s32.totalorder %s1458_s16, %s1458_s16 }
  0x1e   :  { %p1465_p0 = por %p1464_p13, %p1463_p12 }
  0x20   :  { %p1466_p1 = pnand %p1465_p0, %p1459_p11 }
  0x22   :  { %1469 = shalt.err (!%p1466_p1)
}
  0x23   :  { %40 = dma.hbm_to_vmem [thread:$0]  %s1744_s2, 5120, %s35_s8, [#allocation6], %s1523_s28, %s1523_s28, %s1524_s29  }
  0x24   :  { %1514 = dma.done.wait [#allocation3], 1024  }
  0x25   :  { %1515 = vsyncadd [#allocation3], 4294966272 }
  0x26   :  { %1516 = dma.done.wait [#allocation6], 5120  }
  0x27   :  { %1517 = vsyncadd [#allocation6], 4294962176  ;;  %v1526_v0 = vmov 0   ;;  %v1527_v1 = vmov 0.0   ;;  %v50_v2 = vld [vmem:[%s1742_s0] sm:$0xff]  ;;  %vm1528_vm0 = vmmov 0   ;;  %v51_v11 = vlaneseq }
  0x28   :  { %1367 = vset.pattern.permute.xlu0 %v1526_v0  ;;  %1224 = vmatprep.subr.bf16.mxu0 %v1527_v1  ;;  %v1368_v3 = vld [vmem:[#allocation2] sm:$0xff]   ;;  %v1369_v4 = vld [vmem:[#allocation2 + $0x8] sm:$0xff]   ;;  %v1370_v5 = vld [vmem:[#allocation2 + $0x10] sm:$0xff]   ;;  %v1529_v14 = vmov 1.0|1.0   ;;  %s1530_s22 = smov 96  }
  0x29   :  { %1244 = vmatprep.subr.bf16.mxu1 %v1527_v1  ;;  %54 = vperm.xlu0 %1367, %v50_v2   ;;  %v1371_v6 = vld [vmem:[#allocation2 + $0x18] sm:$0xff]   ;;  %v1372_v7 = vld [vmem:[#allocation2 + $0x20] sm:$0xff]   ;;  %v1373_v8 = vld [vmem:[#allocation2 + $0x28] sm:$0xff]   ;;  %v1613_v12 = vand.u32 127, %v51_v11  ;;  %vm304_vm3 = vcmask 130048   ;;  %v299_v49 = vshrl.u32 %v51_v11, 7 }
  0x2a   :  { %1240 = vmatprep.mubr.msk.bf16.mxu0 %vm1528_vm0, %v1527_v1  ;;  %1260 = vmatprep.mubr.msk.bf16.mxu1 %vm1528_vm0, %v1527_v1  ;;  %v1374_v9 = vld [vmem:[#allocation2 + $0x30] sm:$0xff]   ;;  %v1375_v10 = vld [vmem:[#allocation2 + $0x38] sm:$0xff]   ;;  %v1376_v15 = vld [vmem:[#allocation5] sm:$0xff]   ;;  %vm381_vm5 = vcmask 64512   ;;  %s1531_s23 = smov 80   ;;  %s1532_s24 = smov 112  }
  0x2b   :  { %1225 = vmatpush3.bf16.msra.mxu0 %v1368_v3  ;;  %1245 = vmatpush3.bf16.msra.mxu1 %v1376_v15  ;;  %v1377_v21 = vld [vmem:[#allocation5 + $0x8] sm:$0xff]   ;;  %v1378_v22 = vld [vmem:[#allocation5 + $0x10] sm:$0xff]   ;;  %v1379_v23 = vld [vmem:[#allocation5 + $0x18] sm:$0xff]   ;;  %vm300_vm4 = vcmp.ge.s32.totalorder %v299_v49, %v1613_v12  ;;  %s1533_s25 = smov 48   ;;  %s1534_s26 = smov 16   ;;  %vm659_vm6 = vcmask 261120  }
  0x2c   :  { %1226 = vmatprep.subr.bf16.mxu0 %v1527_v1  ;;  %1246 = vmatprep.subr.bf16.mxu1 %v1527_v1  ;;  %v1380_v24 = vld [vmem:[#allocation5 + $0x20] sm:$0xff]   ;;  %v1381_v25 = vld [vmem:[#allocation5 + $0x28] sm:$0xff]   ;;  %v1382_v26 = vld [vmem:[#allocation5 + $0x30] sm:$0xff]   ;;  %s1535_s10 = smov [#allocation7]  }
  0x2d   :  { %v1383_v27 = vld [vmem:[#allocation5 + $0x38] sm:$0xff]   ;;  %v1121_v37 = vld [vmem:[%s1745_s3] ss:$0 sm:$0xff]  ;;  %v1122_v39 = vld [vmem:[%s1745_s3 + $0x1] ss:$0 sm:$0xff]  ;;  %s1086_s11 = sshll.u32 %s1535_s10, 4  ;;  %s1087_s11 = int_to_ptr.vmem [resolvable:$true] %s1086_s11 }
  0x2e   :  { %v1140_v49 = vld [vmem:[%s1745_s3 + $0x2] ss:$0 sm:$0xff]  ;;  %s1470_s12 = scalar_lea.vmem %s1087_s11, 128  ;;  %p1475_p3 = scmp.lt.s32.totalorder %s1087_s11, %s1087_s11 }
  0x2f   :  { %1227 = vmatpush3.bf16.msra.mxu0 %v1369_v4  ;;  %1247 = vmatpush3.bf16.msra.mxu1 %v1377_v21  ;;  %p1471_p2 = scmp.ne.s32.totalorder %s1087_s11, %s1470_s12  ;;  %p1476_p4 = scmp.lt.s32.totalorder %s1470_s12, %s1470_s12 }
  0x30   :  { %1228 = vmatprep.subr.bf16.mxu0 %v1527_v1  ;;  %1248 = vmatprep.subr.bf16.mxu1 %v1527_v1 }
  0x31   :  { %p1477_p5 = por %p1476_p4, %p1475_p3 }
  0x33   :  { %1229 = vmatpush3.bf16.msra.mxu0 %v1370_v5  ;;  %1249 = vmatpush3.bf16.msra.mxu1 %v1378_v22  ;;  %p1478_p6 = pnand %p1477_p5, %p1471_p2 }
  0x34   :  { %1230 = vmatprep.subr.bf16.mxu0 %v1527_v1  ;;  %1250 = vmatprep.subr.bf16.mxu1 %v1527_v1 }
  0x37   :  { %1231 = vmatpush3.bf16.msra.mxu0 %v1371_v6  ;;  %1251 = vmatpush3.bf16.msra.mxu1 %v1379_v23 }
  0x38   :  { %1232 = vmatprep.subr.bf16.mxu0 %v1527_v1  ;;  %1252 = vmatprep.subr.bf16.mxu1 %v1527_v1 }
  0x3b   :  { %1233 = vmatpush3.bf16.msra.mxu0 %v1372_v7  ;;  %1253 = vmatpush3.bf16.msra.mxu1 %v1380_v24 }
  0x3c   :  { %1234 = vmatprep.subr.bf16.mxu0 %v1527_v1  ;;  %1254 = vmatprep.subr.bf16.mxu1 %v1527_v1 }
  0x3f   :  { %1235 = vmatpush3.bf16.msra.mxu0 %v1373_v8  ;;  %1255 = vmatpush3.bf16.msra.mxu1 %v1381_v25 }
  0x40   :  { %1236 = vmatprep.subr.bf16.mxu0 %v1527_v1  ;;  %1256 = vmatprep.subr.bf16.mxu1 %v1527_v1 }
  0x43   :  { %1237 = vmatpush3.bf16.msra.mxu0 %v1374_v9  ;;  %1257 = vmatpush3.bf16.msra.mxu1 %v1382_v26  ;;  %v1386_v26 = vld [vmem:[#allocation5 + $0x80] sm:$0xff]  }
  0x44   :  { %1238 = vmatprep.subr.bf16.mxu0 %v1527_v1  ;;  %1258 = vmatprep.subr.bf16.mxu1 %v1527_v1 }
  0x47   :  { %1239 = vmatpush3.bf16.msra.mxu0 %v1375_v10  ;;  %1259 = vmatpush3.bf16.msra.mxu1 %v1383_v27 }
  0x48   :  { %1264 = vmatprep.subr.mxu0 %v1527_v1  ;;  %1292 = vmatprep.subr.bf16.mxu1 %v1527_v1 }
  0xa8   :  { %v55_v13 = vpop.permute.xlu0 %54 }
  0xa9   :  { %vm56_vm1 = vcmp.eq.s32.totalorder %v1613_v12, %v55_v13 }
  0xaa   :  { %vm1119_vm2 = vmpackc.low %vm56_vm1, %vm56_vm1 }
  0xab   :  { %1241 = vmatmul.mubr.msk.bf16.vlgmr.msra.gmra.mrb[0].mxu0 %vm1119_vm2, %v1529_v14 }
  0xac   :  { %1266 = vmatprep.mubr.msk.f32.mxu0 %vm1528_vm0, %v1527_v1 }
 0x17e   :  { %v1619_v16 = vpop.f32.mrb[0].mxu0 }
 0x17f   :  { %170 = vadd.xlane.f32.xlu0 %v1619_v16  ;;  %v1242_v17 = vpop.f32.mrb[1].mxu0  ;;  %v173_v18 = vmul.f32 %v1619_v16, %v1619_v16 }
 0x180   :  { %v161_v19 = vpop.f32.mrb[2].mxu0 }
 0x181   :  { %174 = vadd.xlane.f32.xlu1 %v173_v18  ;;  %v1243_v20 = vpop.f32.mrb[3].mxu0  ;;  %v1384_v19 = vld [vmem:[#allocation5 + $0x40] sm:$0xff]  }
 0x182   :  { %v1385_v20 = vld [vmem:[#allocation5 + $0x48] sm:$0xff]  }
 0x20c   :  { %v171_v28 = vpop.xlane.xlu0 %170 }
 0x20d   :  { %v172_v29 = vmul.f32 0.03125, %v171_v28 }
 0x20e   :  { %v175_v30 = vpop.xlane.xlu1 %174 }
 0x20f   :  { %v177_v31 = vmul.f32 %v172_v29, %v172_v29  ;;  %v176_v32 = vmul.f32 0.03125, %v175_v30  ;;  %v179_v35 = vsub.f32 %v1619_v16, %v172_v29 }
 0x211   :  { %v178_v33 = vsub.f32 %v176_v32, %v177_v31 }
 0x213   :  { %v180_v34 = vadd.f32 1e-05, %v178_v33  ;;  %v1387_v33 = vld [vmem:[#allocation5 + $0x88] sm:$0xff]  }
 0x215   :  { %1410 = vrsqrt.f32 %v180_v34  ;;  %v1388_v34 = vld [vmem:[#allocation5 + $0x90] sm:$0xff]  }
 0x21f   :  { %v1411_v36 = vpop.eup %1410 }
 0x220   :  { %v182_v38 = vmul.f32 %v1411_v36, %v179_v35  ;;  %v1389_v35 = vld [vmem:[#allocation5 + $0x98] sm:$0xff]   ;;  %v1391_v36 = vld [vmem:[#allocation5 + $0xa8] sm:$0xff]  }
 0x222   :  { %v187_v40 = vmul.f32 %v1121_v37, %v182_v38  ;;  %v1392_v37 = vld [vmem:[#allocation5 + $0xb0] sm:$0xff]   ;;  %v1393_v38 = vld [vmem:[#allocation5 + $0xb8] sm:$0xff]  }
 0x224   :  { %v192_v41 = vadd.f32 %v1122_v39, %v187_v40  ;;  %v1394_v39 = vld [vmem:[#allocation5 + $0xc0] sm:$0xff]  }
 0x226   :  { %v193_v42 = vpack.c.bf16 %v192_v41, %v192_v41 }
 0x228   :  { %1261 = vmatmul.mubr.bf16.vlgmr.msra.gmra.mrb[0].mxu1 %v193_v42 }
 0x229   :  { %1308 = vmatprep.mubr.msk.bf16.mxu1 %vm1528_vm0, %v1527_v1  ;;  %1293 = vmatpush3.bf16.msra.mxu1 %v1386_v26  ;;  %v1408_v26 = vld [vmem:[#allocation5 + $0x130] sm:$0xff]  }
 0x22a   :  { %1294 = vmatprep.subr.bf16.mxu1 %v1527_v1 }
 0x22d   :  { %1295 = vmatpush3.bf16.msra.mxu1 %v1387_v33 }
 0x22e   :  { %1296 = vmatprep.subr.bf16.mxu1 %v1527_v1 }
 0x231   :  { %1297 = vmatpush3.bf16.msra.mxu1 %v1388_v34 }
 0x232   :  { %1298 = vmatprep.subr.bf16.mxu1 %v1527_v1 }
 0x235   :  { %1299 = vmatpush3.bf16.msra.mxu1 %v1389_v35 }
 0x236   :  { %1300 = vmatprep.subr.bf16.mxu1 %v1527_v1 }
 0x2fb   :  { %v292_v43 = vpop.f32.mrb[0].mxu1 }
 0x2fc   :  { %393 = vrot.lane.b32.xlu0 %v292_v43, %s1523_s28  ;;  %302 = vrot.lane.b32.xlu1 %v292_v43, %s1530_s22  ;;  %v1262_v44 = vpop.f32.mrb[1].mxu1 }
 0x2fd   :  { %v295_v45 = vpop.f32.mrb[2].mxu1 }
 0x2fe   :  { %v1263_v46 = vpop.f32.mrb[3].mxu1 }
 0x36e   :  { %v303_v47 = vpop.permute.xlu1 %302  ;;  %v394_v48 = vpop.permute.xlu0 %393 }
 0x36f   :  { %1265 = vmatpush3.xpose.msk.msra.mxu0 %vm304_vm3, %v303_v47 }
 0x370   :  { %1269 = vmatprep.subr.mxu0 %v1527_v1 }
 0x372   :  { %1267 = vmatmul.mubr.msk.f32.vlgmr.msra.gmra.mrb[4].mxu0 %vm304_vm3, %v292_v43 }
 0x373   :  { %1270 = vmatpush3.msra.mxu0 %v394_v48  ;;  %1271 = vmatprep.mubr.msk.f32.mxu0 %vm1528_vm0, %v1527_v1 }
 0x374   :  { %1274 = vmatprep.subr.mxu0 %v1527_v1 }
 0x445   :  { %v375_v50 = vpop.f32.mrb[4].mxu0 }
 0x446   :  { %v379_v51 = vmul.f32 0.25, %v375_v50  ;;  %v1268_v52 = vpop.f32.mrb[5].mxu0 }
 0x448   :  { %v380_v53 = vsel %vm300_vm4, %v379_v51, -1e+30  ;;  %v1141_v51 = vld [vmem:[%s1745_s3 + $0x3] ss:$0 sm:$0xff] }
 0x449   :  { %v382_v54 = vsel %vm381_vm5, %v380_v53, -inf }
 0x44a   :  { %383 = vmax.xlane.f32.xlu1 %v382_v54 }
 0x45b   :  { %471 = vrot.lane.b32.xlu1 %v292_v43, %s1531_s23 }
 0x4d7   :  { %v384_v55 = vpop.xlane.xlu1 %383 }
 0x4d8   :  { %v385_v56 = vsub.f32 %v380_v53, %v384_v55  ;;  %v1395_v55 = vld [vmem:[#allocation5 + $0xc8] sm:$0xff]  }
 0x4da   :  { %v386_v57 = vmul.f32 1.442695, %v385_v56  ;;  %v1396_v56 = vld [vmem:[#allocation5 + $0xd0] sm:$0xff]  }
 0x4db   :  { %v472_v63 = vpop.permute.xlu1 %471 }
 0x4dc   :  { %1412 = vpow2.f32 %v386_v57  ;;  %v1397_v57 = vld [vmem:[#allocation5 + $0xd8] sm:$0xff]  }
 0x4e6   :  { %v1413_v58 = vpop.eup %1412 }
 0x4e7   :  { %v388_v59 = vsel %vm381_vm5, %v1413_v58, 0.0 }
 0x4e8   :  { %389 = vadd.xlane.f32.xlu0 %v388_v59  ;;  %v1399_v59 = vld [vmem:[#allocation5 + $0xe8] sm:$0xff]  }
 0x4fe   :  { %469 = vrot.lane.b32.xlu0 %v292_v43, %s1532_s24 }
 0x575   :  { %v390_v60 = vpop.xlane.xlu0 %389 }
 0x576   :  { %1414 = vrcp.f32 %v390_v60  ;;  %v1400_v60 = vld [vmem:[#allocation5 + $0xf0] sm:$0xff]  }
 0x579   :  { %v470_v0 = vpop.permute.xlu0 %469 }
 0x580   :  { %v1415_v61 = vpop.eup %1414 }
 0x581   :  { %v392_v62 = vmul.f32 %v1415_v61, %v1413_v58  ;;  %v1398_v58 = vld [vmem:[#allocation5 + $0xe0] sm:$0xff]   ;;  %v1401_v61 = vld [vmem:[#allocation5 + $0xf8] sm:$0xff]  }
 0x583   :  { %1272 = vmatmul.mubr.msk.f32.vlgmr.msra.gmra.mrb[6].mxu0 %vm381_vm5, %v392_v62 }
 0x584   :  { %1275 = vmatpush3.xpose.msk.msra.mxu0 %vm304_vm3, %v472_v63  ;;  %1276 = vmatprep.mubr.msk.f32.mxu0 %vm1528_vm0, %v1527_v1 }
 0x585   :  { %1279 = vmatprep.subr.mxu0 %v1527_v1 }
 0x587   :  { %1277 = vmatmul.mubr.msk.f32.vlgmr.msra.gmra.mrb[8].mxu0 %vm304_vm3, %v470_v0 }
 0x588   :  { %1281 = vmatprep.mubr.msk.f32.mxu0 %vm1528_vm0, %v1527_v1 }
 0x656   :  { %v465_v2 = vpop.f32.mrb[6].mxu0 }
 0x657   :  { %v1273_v3 = vpop.f32.mrb[7].mxu0 }
 0x65a   :  { %v543_v4 = vpop.f32.mrb[8].mxu0 }
 0x65b   :  { %v547_v5 = vmul.f32 0.25, %v543_v4  ;;  %v1278_v6 = vpop.f32.mrb[9].mxu0 }
 0x65d   :  { %v548_v7 = vsel %vm300_vm4, %v547_v5, -1e+30 }
 0x65e   :  { %v549_v8 = vsel %vm381_vm5, %v548_v7, -inf }
 0x65f   :  { %550 = vmax.xlane.f32.xlu0 %v549_v8 }
 0x675   :  { %560 = vrot.lane.b32.xlu0 %v292_v43, %s1533_s25 }
 0x6ec   :  { %v551_v9 = vpop.xlane.xlu0 %550 }
 0x6ed   :  { %v552_v10 = vsub.f32 %v548_v7, %v551_v9 }
 0x6ef   :  { %v553_v11 = vmul.f32 1.442695, %v552_v10 }
 0x6f0   :  { %v561_v13 = vpop.permute.xlu0 %560 }
 0x6f1   :  { %1416 = vpow2.f32 %v553_v11  ;;  %1280 = vmatpush3.msra.mxu0 %v561_v13 }
 0x6f2   :  { %1284 = vmatprep.subr.bf16.mxu0 %v1527_v1 }
 0x6fb   :  { %v1417_v14 = vpop.eup %1416 }
 0x6fc   :  { %v555_v15 = vsel %vm381_vm5, %v1417_v14, 0.0 }
 0x6fd   :  { %556 = vadd.xlane.f32.xlu1 %v555_v15 }
 0x78a   :  { %v557_v17 = vpop.xlane.xlu1 %556 }
 0x78b   :  { %1418 = vrcp.f32 %v557_v17 }
 0x795   :  { %v1419_v12 = vpop.eup %1418 }
 0x796   :  { %v559_v18 = vmul.f32 %v1419_v12, %v1417_v14  ;;  %v1402_v14 = vld [vmem:[#allocation5 + $0x100] sm:$0xff]  }
 0x798   :  { %1282 = vmatmul.mubr.msk.f32.vlgmr.msra.gmra.mrb[10].mxu0 %vm381_vm5, %v559_v18 }
 0x799   :  { %1288 = vmatprep.mubr.msk.bf16.mxu0 %vm1528_vm0, %v1527_v1  ;;  %1285 = vmatpush3.bf16.msra.mxu0 %v1384_v19 }
 0x79a   :  { %1286 = vmatprep.subr.bf16.mxu0 %v1527_v1 }
 0x79d   :  { %1287 = vmatpush3.bf16.msra.mxu0 %v1385_v20 }
 0x79e   :  { %1312 = vmatprep.subr.bf16.mxu0 %v1527_v1 }
 0x86b   :  { %v632_v21 = vpop.f32.mrb[10].mxu0 }
 0x86c   :  { %637 = vrot.lane.b32.xlu1 %v632_v21, %s1534_s26  ;;  %v1283_v22 = vpop.f32.mrb[11].mxu0  ;;  %v1403_v21 = vld [vmem:[#allocation5 + $0x108] sm:$0xff]  }
 0x86d   :  { %v1404_v22 = vld [vmem:[#allocation5 + $0x110] sm:$0xff]  }
 0x8de   :  { %v638_v23 = vpop.permute.xlu1 %637 }
 0x8df   :  { %v640_v24 = vsel %vm304_vm3, %v465_v2, %v638_v23  ;;  %v1405_v23 = vld [vmem:[#allocation5 + $0x118] sm:$0xff]  }
 0x8e0   :  { %v641_v25 = vpack.c.bf16 %v640_v24, %v640_v24  ;;  %v1406_v24 = vld [vmem:[#allocation5 + $0x120] sm:$0xff]  }
 0x8e2   :  { %1289 = vmatmul.mubr.msk.bf16.vlgmr.msra.gmra.mrb[12].mxu0 %vm659_vm6, %v641_v25  ;;  %v1407_v25 = vld [vmem:[#allocation5 + $0x128] sm:$0xff]  }
 0x8e3   :  { %1328 = vmatprep.mubr.msk.bf16.mxu0 %vm1528_vm0, %v1527_v1  ;;  %1313 = vmatpush3.bf16.msra.mxu0 %v1394_v39 }
 0x8e4   :  { %1314 = vmatprep.subr.bf16.mxu0 %v1527_v1 }
 0x8e7   :  { %1315 = vmatpush3.bf16.msra.mxu0 %v1395_v55 }
 0x8e8   :  { %1316 = vmatprep.subr.bf16.mxu0 %v1527_v1 }
 0x8eb   :  { %1317 = vmatpush3.bf16.msra.mxu0 %v1396_v56 }
 0x8ec   :  { %1318 = vmatprep.subr.bf16.mxu0 %v1527_v1 }
 0x8ef   :  { %1319 = vmatpush3.bf16.msra.mxu0 %v1397_v57 }
 0x8f0   :  { %1320 = vmatprep.subr.bf16.mxu0 %v1527_v1 }
 0x8f3   :  { %1321 = vmatpush3.bf16.msra.mxu0 %v1398_v58 }
 0x8f4   :  { %1322 = vmatprep.subr.bf16.mxu0 %v1527_v1 }
 0x8f7   :  { %1323 = vmatpush3.bf16.msra.mxu0 %v1399_v59 }
 0x8f8   :  { %1324 = vmatprep.subr.bf16.mxu0 %v1527_v1 }
 0x8fb   :  { %1325 = vmatpush3.bf16.msra.mxu0 %v1400_v60 }
 0x8fc   :  { %1326 = vmatprep.subr.bf16.mxu0 %v1527_v1 }
 0x8ff   :  { %1327 = vmatpush3.bf16.msra.mxu0 %v1401_v61 }
 0x9b5   :  { %v697_v27 = vpop.f32.mrb[12].mxu0 }
 0x9b6   :  { %v1676_v28 = vadd.f32 %v697_v27, %v1619_v16  ;;  %v1290_v29 = vpop.f32.mrb[13].mxu0  ;;  %v1390_v16 = vld [vmem:[#allocation5 + $0xa0] sm:$0xff]   ;;  %v1409_v27 = vld [vmem:[#allocation5 + $0x138] sm:$0xff]  }
 0x9b7   :  { %v700_v30 = vpop.f32.mrb[14].mxu0  ;;  %1301 = vmatpush3.bf16.msra.mxu1 %v1390_v16 }
 0x9b8   :  { %704 = vadd.xlane.f32.xlu0 %v1676_v28  ;;  %v1291_v31 = vpop.f32.mrb[15].mxu0  ;;  %v707_v32 = vmul.f32 %v1676_v28, %v1676_v28  ;;  %1302 = vmatprep.subr.bf16.mxu1 %v1527_v1 }
 0x9ba   :  { %708 = vadd.xlane.f32.xlu1 %v707_v32 }
 0x9bb   :  { %1303 = vmatpush3.bf16.msra.mxu1 %v1391_v36  ;;  %v1158_v36 = vld [vmem:[%s1745_s3 + $0x4] ss:$0 sm:$0xff] }
 0x9bc   :  { %1304 = vmatprep.subr.bf16.mxu1 %v1527_v1 }
 0x9bf   :  { %1305 = vmatpush3.bf16.msra.mxu1 %v1392_v37 }
 0x9c0   :  { %1306 = vmatprep.subr.bf16.mxu1 %v1527_v1 }
 0x9c3   :  { %1307 = vmatpush3.bf16.msra.mxu1 %v1393_v38 }
 0x9c4   :  { %1332 = vmatprep.subr.bf16.mxu1 %v1527_v1 }
 0xa45   :  { %v705_v40 = vpop.xlane.xlu0 %704 }
 0xa46   :  { %v706_v41 = vmul.f32 0.03125, %v705_v40 }
 0xa47   :  { %v709_v42 = vpop.xlane.xlu1 %708 }
 0xa48   :  { %v711_v43 = vmul.f32 %v706_v41, %v706_v41  ;;  %v710_v44 = vmul.f32 0.03125, %v709_v42  ;;  %v713_v47 = vsub.f32 %v1676_v28, %v706_v41 }
 0xa4a   :  { %v712_v45 = vsub.f32 %v710_v44, %v711_v43 }
 0xa4c   :  { %v714_v46 = vadd.f32 1e-05, %v712_v45 }
 0xa4e   :  { %1420 = vrsqrt.f32 %v714_v46 }
 0xa58   :  { %v1421_v48 = vpop.eup %1420 }
 0xa59   :  { %v716_v50 = vmul.f32 %v1421_v48, %v713_v47 }
 0xa5b   :  { %v721_v52 = vmul.f32 %v1140_v49, %v716_v50 }
 0xa5d   :  { %v726_v53 = vadd.f32 %v1141_v51, %v721_v52 }
 0xa5f   :  { %v727_v54 = vpack.c.bf16 %v726_v53, %v726_v53 }
 0xa61   :  { %1309 = vmatmul.mubr.bf16.vlgmr.msra.gmra.mrb[4].mxu1 %v727_v54 }
 0xa62   :  { %1348 = vmatprep.mubr.msk.bf16.mxu1 %vm1528_vm0, %v1527_v1  ;;  %1333 = vmatpush3.bf16.msra.mxu1 %v1402_v14 }
 0xa63   :  { %1334 = vmatprep.subr.bf16.mxu1 %v1527_v1 }
 0xa66   :  { %1335 = vmatpush3.bf16.msra.mxu1 %v1403_v21 }
 0xa67   :  { %1336 = vmatprep.subr.bf16.mxu1 %v1527_v1 }
 0xa6a   :  { %1337 = vmatpush3.bf16.msra.mxu1 %v1404_v22 }
 0xa6b   :  { %1338 = vmatprep.subr.bf16.mxu1 %v1527_v1 }
 0xa6e   :  { %1339 = vmatpush3.bf16.msra.mxu1 %v1405_v23 }
 0xa6f   :  { %1340 = vmatprep.subr.bf16.mxu1 %v1527_v1 }
 0xa72   :  { %1341 = vmatpush3.bf16.msra.mxu1 %v1406_v24 }
 0xa73   :  { %1342 = vmatprep.subr.bf16.mxu1 %v1527_v1 }
 0xa76   :  { %1343 = vmatpush3.bf16.msra.mxu1 %v1407_v25 }
 0xa77   :  { %1344 = vmatprep.subr.bf16.mxu1 %v1527_v1 }
 0xa7a   :  { %1345 = vmatpush3.bf16.msra.mxu1 %v1408_v26 }
 0xa7b   :  { %1346 = vmatprep.subr.bf16.mxu1 %v1527_v1  ;;  %v1159_v1 = vld [vmem:[%s1745_s3 + $0x5] ss:$0 sm:$0xff] }
 0xa7e   :  { %1347 = vmatpush3.bf16.msra.mxu1 %v1409_v27 }
 0xb34   :  { %v827_v62 = vpop.f32.mrb[4].mxu1 }
 0xb35   :  { %v833_v63 = vmul.f32 %v827_v62, %v827_v62  ;;  %v1310_v0 = vpop.f32.mrb[5].mxu1 }
 0xb36   :  { %v830_v2 = vpop.f32.mrb[6].mxu1 }
 0xb37   :  { %v834_v3 = vmul.f32 %v833_v63, %v827_v62  ;;  %v1311_v4 = vpop.f32.mrb[7].mxu1 }
 0xb39   :  { %v835_v5 = vmul.f32 0.044715, %v834_v3 }
 0xb3b   :  { %v836_v6 = vadd.f32 %v835_v5, %v827_v62 }
 0xb3d   :  { %v837_v7 = vmul.f32 0.7978846, %v836_v6 }
 0xb3f   :  { %1422 = vtanh.f32 %v837_v7 }
 0xb49   :  { %v1423_v8 = vpop.eup %1422 }
 0xb4a   :  { %v839_v9 = vadd.f32 1.0, %v1423_v8 }
 0xb4c   :  { %v840_v10 = vmul.f32 0.5, %v839_v9 }
 0xb4e   :  { %v841_v11 = vmul.f32 %v840_v10, %v827_v62 }
 0xb50   :  { %v842_v13 = vpack.c.bf16 %v841_v11, %v841_v11 }
 0xb52   :  { %1329 = vmatmul.mubr.bf16.vlgmr.msra.gmra.mrb[16].mxu0 %v842_v13 }
 0xc25   :  { %v942_v15 = vpop.f32.mrb[16].mxu0 }
 0xc26   :  { %v948_v17 = vadd.f32 %v942_v15, %v1676_v28  ;;  %v1330_v12 = vpop.f32.mrb[17].mxu0 }
 0xc27   :  { %v945_v18 = vpop.f32.mrb[18].mxu0 }
 0xc28   :  { %949 = vadd.xlane.f32.xlu0 %v948_v17  ;;  %v1331_v19 = vpop.f32.mrb[19].mxu0  ;;  %v952_v20 = vmul.f32 %v948_v17, %v948_v17 }
 0xc2c   :  { %953 = vadd.xlane.f32.xlu0 %v952_v20 }
 0xcb5   :  { %v950_v28 = vpop.xlane.xlu0 %949 }
 0xcb6   :  { %v951_v29 = vmul.f32 0.03125, %v950_v28 }
 0xcb8   :  { %v956_v31 = vmul.f32 %v951_v29, %v951_v29  ;;  %v958_v35 = vsub.f32 %v948_v17, %v951_v29 }
 0xcb9   :  { %v954_v30 = vpop.xlane.xlu0 %953 }
 0xcba   :  { %v955_v32 = vmul.f32 0.03125, %v954_v30 }
 0xcbc   :  { %v957_v33 = vsub.f32 %v955_v32, %v956_v31 }
 0xcbe   :  { %v959_v34 = vadd.f32 1e-05, %v957_v33 }
 0xcc0   :  { %1424 = vrsqrt.f32 %v959_v34 }
 0xcca   :  { %v1425_v16 = vpop.eup %1424 }
 0xccb   :  { %v961_v37 = vmul.f32 %v1425_v16, %v958_v35 }
 0xccd   :  { %v966_v38 = vmul.f32 %v1158_v36, %v961_v37 }
 0xccf   :  { %v971_v39 = vadd.f32 %v1159_v1, %v966_v38 }
 0xcd1   :  { %v973_v40 = vpack.c.bf16 %v971_v39, %v971_v39  ;;  %972 = vst [vmem:[#allocation7] sm:$0xff] %v971_v39 }
 0xcd3   :  { %1349 = vmatmul.mubr.bf16.vlgmr.msra.gmra.mrb[8].mxu1 %v973_v40 }
 0xcd4   :  { %1481 = shalt.err (!%p1478_p6)
}
 0xcd5   :  { %s1482_s15 = scalar_lea.hbm %s1746_s4, 128 }
 0xcd6   :  { %p1483_p7 = scmp.ne.s32.totalorder %s1746_s4, %s1482_s15  ;;  %p1486_p8 = scmp.lt.u32.totalorder %s1482_s15, %s1746_s4 }
 0xcd8   :  { %p1488_p9 = pnand %p1486_p8, %p1483_p7 }
 0xcda   :  { %1491 = shalt.err (!%p1488_p9)
}
 0xcdb   :  { %1089 = dma.vmem_to_hbm [thread:$0]  %s1087_s11, 128, %s1746_s4, [#allocation4]  }
 0xcdc   :  { %s1536_s0 = smov [#allocation8]  }
 0xcdd   :  { %s1096_s2 = sshll.u32 %s1536_s0, 4  ;;  %s1097_s2 = int_to_ptr.vmem [resolvable:$true] %s1096_s2 }
 0xcde   :  { %s1492_s20 = scalar_lea.vmem %s1097_s2, 128  ;;  %p1497_p11 = scmp.lt.s32.totalorder %s1097_s2, %s1097_s2 }
 0xcdf   :  { %p1493_p10 = scmp.ne.s32.totalorder %s1097_s2, %s1492_s20  ;;  %p1498_p12 = scmp.lt.s32.totalorder %s1492_s20, %s1492_s20 }
 0xce1   :  { %p1499_p13 = por %p1498_p12, %p1497_p11 }
 0xce3   :  { %p1500_p0 = pnand %p1499_p13, %p1493_p10 }
 0xda6   :  { %v1073_v41 = vpop.f32.mrb[8].mxu1 }
 0xda7   :  { %1079 = vst [vmem:[#allocation8] sm:$0xff] %v1073_v41  ;;  %v1350_v42 = vpop.f32.mrb[9].mxu1 }
 0xda8   :  { %v1076_v43 = vpop.f32.mrb[10].mxu1 }
 0xda9   :  { %1503 = shalt.err (!%p1500_p0)
}
 0xdaa   :  { %s1504_s23 = scalar_lea.hbm %s1747_s5, 128 }
 0xdab   :  { %p1505_p1 = scmp.ne.s32.totalorder %s1747_s5, %s1504_s23  ;;  %p1508_p2 = scmp.lt.u32.totalorder %s1504_s23, %s1747_s5 }
 0xdad   :  { %p1510_p3 = pnand %p1508_p2, %p1505_p1 }
 0xdaf   :  { %1513 = shalt.err (!%p1510_p3)
}
 0xdb0   :  { %1099 = dma.vmem_to_hbm [thread:$0]  %s1097_s2, 128, %s1747_s5, [#allocation9]   ;;  %v1351_v44 = vpop.f32.mrb[11].mxu1 }
 0xdb1   :  { %1518 = dma.done.wait [#allocation4], 128  }
 0xdb2   :  { %1519 = vsyncadd [#allocation4], 4294967168 }
 0xdb3   :  { %1520 = dma.done.wait [#allocation9], 128  }
 0xdb4   :  { %1521 = vsyncadd [#allocation9], 4294967168 }
 0xdb5   :  { %1106 = vsyncpa [#allocation3], 1 }
 0xdb6   :  { %1107 = vsyncpa [#allocation6], 1 }
 0xdb7   :  { %1108 = vsyncpa [#allocation4], 1 }
 0xdb8   :  { %1109 = vsyncpa [#allocation9], 1 }

</bundles_post_ra>
